<compile_context>
chip_gen: v7x
topology: tpu7x:2x2x1
jax: 0.10.0
libtpu: 0.0.40
codegen_flags: <defaults>
</compile_context>

<pallas_src>
import functools

import jax
import jax.numpy as jnp
import numpy as np
from jax.experimental import pallas as pl
from jax.experimental.pallas import tpu as pltpu


def _round_up(x, m):
    return (x + m - 1) // m * m


def _combiner_kernel(x_ref, w_ref, fix_ref, o_ref, *,
                     combiner_type, agg_method, add_fixation, num_stim, din):
    """One (TB, TN) output tile per grid step.

    combiner_type 'a' : x_ref (TB, S*Din), w_ref (Din, TN)      -- stimuli = lane groups
    combiner_type 'b'/'c': x_ref (TB, S*Din), w_ref (S*Din, TN) -- stim sum folded into K
    fix_ref : (1, TN) f32      o_ref : (TB, TN) f32
    """
    if combiner_type == 'a':
        # Nonlinearity before aggregation -> project each stimulus (static lane slices).
        w = w_ref[...]
        acc = None
        for s in range(num_stim):                      # static unroll; S is small
            xs = x_ref[:, s * din:(s + 1) * din]
            proj = jnp.dot(xs, w, preferred_element_type=jnp.float32)
            t = jnp.tanh(proj)                         # native EUP tanh
            acc = t if acc is None else acc + t
        if agg_method == 'mean':
            acc = acc * (1.0 / num_stim)
        res = acc
    else:
        # 'b'/'c': aggregation commutes with the projection; the stimulus sum (and 1/S)
        # is pre-folded into the stacked weight -> single MXU matmul, K = S*Din.
        res = jnp.dot(x_ref[...], w_ref[...], preferred_element_type=jnp.float32)
        if combiner_type == 'b':
            res = jnp.tanh(res)

    if add_fixation:
        res = res + fix_ref[...]                       # (1, TN) broadcasts over TB
    o_ref[...] = res.astype(o_ref.dtype)


def palimpsest_stimulus_combiner(sensory_response, weight, fixation_token, *,
                                 combiner_type='a', agg_method='mean',
                                 add_fixation=True, batch_tile=512,
                                 input_dtype=jnp.float32):
    """sensory_response: [..., S, Din]
       weight          : [Dout, Din]   (PyTorch nn.Linear(..., bias=False).weight layout)
       fixation_token  : [Dout]
       input_dtype     : dtype for the MXU operands (f32 default; bf16 halves HBM traffic,
                         elementwise math stays f32)
       returns         : [..., Dout] float32
    """
    assert combiner_type in ('a', 'b', 'c')
    assert agg_method in ('mean', 'sum')

    *lead, S, Din = sensory_response.shape
    Dout = weight.shape[0]
    B = int(np.prod(lead)) if lead else 1

    # Dense 2-D layout: [B, S*Din] is a free (contiguous) reshape of the HBM buffer.
    x = sensory_response.reshape(B, S * Din).astype(input_dtype)

    # ---- tile selection -------------------------------------------------------------
    # Lane-dense output tiles; tile Dout only when it is large (VMEM headroom on v7x).
    TN = 512 if Dout > 2048 else _round_up(Dout, 128)
    Dout_p = _round_up(Dout, TN)
    n_n = Dout_p // TN

    TB = min(_round_up(batch_tile, 8), _round_up(B, 8))
    # Ensure >= 2 grid steps when the batch allows (both v7x TensorCores get work).
    if (-(-B // TB)) * n_n < 2 and B > 8:
        TB = max(8, _round_up(-(-B // 2), 8))
    Bp = _round_up(B, TB)
    if Bp != B:
        x = jnp.pad(x, ((0, Bp - B), (0, 0)))          # zero rows; sliced off below
    n_b = Bp // TB

    # ---- parameter prep (tiny, one-time XLA ops) ------------------------------------
    w_t = weight.T                                      # (Din, Dout): y = x @ W.T
    agg_scale = (1.0 / S) if agg_method == 'mean' else 1.0
    if combiner_type == 'a':
        w_eff = w_t
    else:
        # Fold the stimulus sum (and the mean's 1/S) into the contraction dimension.
        w_eff = jnp.tile(w_t * agg_scale, (S, 1))       # (S*Din, Dout)
    if Dout_p != Dout:
        w_eff = jnp.pad(w_eff, ((0, 0), (0, Dout_p - Dout)))
    w_eff = w_eff.astype(input_dtype)
    K_eff = w_eff.shape[0]

    fix = fixation_token.reshape(1, Dout).astype(jnp.float32)
    if Dout_p != Dout:
        fix = jnp.pad(fix, ((0, 0), (0, Dout_p - Dout)))

    # ---- VMEM budget (default scoped limit is only 16/32 MiB) -----------------------
    in_itemsize = jnp.dtype(input_dtype).itemsize
    x_tile_b = TB * S * Din * in_itemsize
    w_tile_b = K_eff * TN * in_itemsize
    fix_tile_b = 8 * TN * 4
    out_tile_b = TB * TN * 4
    needed = 2 * (x_tile_b + w_tile_b + fix_tile_b + out_tile_b)   # double-buffered
    vmem_limit = int(min(max(2 * needed + (4 << 20), 16 << 20), 64 << 20))

    # Weight / fixation are never re-fetched when Dout is untiled; single-buffer them only
    # when they are big enough to matter (v7x 64 MiB VMEM) -- small shapes skip this path.
    w_pipeline = {}
    fix_pipeline = {}
    if n_n == 1 and (K_eff * Dout_p * in_itemsize) >= (1 << 20) and hasattr(pl, "Buffered"):
        w_pipeline = dict(pipeline_mode=pl.Buffered(1))
        fix_pipeline = dict(pipeline_mode=pl.Buffered(1))

    kernel = functools.partial(
        _combiner_kernel,
        combiner_type=combiner_type,
        agg_method=agg_method,
        add_fixation=add_fixation,
        num_stim=S,
        din=Din,
    )

    n_tanh = {'a': S, 'b': 1, 'c': 0}[combiner_type]
    cost = pl.CostEstimate(
        flops=2 * Bp * S * Din * Dout_p,
        transcendentals=Bp * Dout_p * n_tanh,
        bytes_accessed=(Bp * S * Din * in_itemsize + K_eff * Dout_p * in_itemsize
                        + Dout_p * 4 + Bp * Dout_p * 4),
    )

    out = pl.pallas_call(
        kernel,
        out_shape=jax.ShapeDtypeStruct((Bp, Dout_p), jnp.float32),
        grid_spec=pltpu.PrefetchScalarGridSpec(
            num_scalar_prefetch=0,
            grid=(n_b, n_n),
            in_specs=[
                pl.BlockSpec((TB, S * Din), lambda i, j: (i, 0)),
                pl.BlockSpec((K_eff, TN), lambda i, j: (0, j), **w_pipeline),
                pl.BlockSpec((1, TN), lambda i, j: (0, j), **fix_pipeline),
            ],
            out_specs=pl.BlockSpec((TB, TN), lambda i, j: (i, j)),
        ),
        compiler_params=pltpu.CompilerParams(
            dimension_semantics=("parallel", "parallel"),
            vmem_limit_bytes=vmem_limit,
        ),
        cost_estimate=cost,
    )(x, w_eff, fix)

    out = out[:B, :Dout]
    return out.reshape(*lead, Dout) if lead else out.reshape(Dout)


# ---------------------------------------------------------------------------------------
# Reference (literal PyTorch-module math) and tests
# ---------------------------------------------------------------------------------------
def _manual_tanh_ref(x):
    e2x = jnp.exp(2.0 * x)
    return (e2x - 1.0) / (e2x + 1.0)


def _reference(sensory_response, weight, fixation_token, *,
               combiner_type, agg_method, add_fixation):
    proj = jnp.einsum('...sd,hd->...sh', sensory_response, weight,
                      precision=jax.lax.Precision.HIGHEST)
    if combiner_type == 'a':
        proj = _manual_tanh_ref(proj)
    agg = proj.mean(-2) if agg_method == 'mean' else proj.sum(-2)
    if combiner_type == 'b':
        agg = _manual_tanh_ref(agg)
    if add_fixation:
        agg = agg + fixation_token
    return agg


if __name__ == "__main__":
    # Small shapes consistent with the module: [batch, num_stimuli, sensory_size]
    B, S, Din, Dout = 8, 3, 32, 128
    key = jax.random.PRNGKey(0)
    k_x, k_w, k_f, k_x2 = jax.random.split(key, 4)

    sensory_response = jax.random.normal(k_x, (B, S, Din), dtype=jnp.float32)

    # Deterministic parameter init (shapes from __init__):
    #   nn.Linear(sensory_pop_size, output_size, bias=False).weight -> [Dout, Din]
    bound = 1.0 / np.sqrt(Din)
    weight = jax.random.uniform(k_w, (Dout, Din), dtype=jnp.float32,
                                minval=-bound, maxval=bound)
    #   fixation_token = randn(output_size) / output_size
    fixation_token = jax.random.normal(k_f, (Dout,), dtype=jnp.float32) / Dout

    configs = [
        dict(combiner_type='a', agg_method='mean', add_fixation=True),
        dict(combiner_type='b', agg_method='sum', add_fixation=True),
        dict(combiner_type='c', agg_method='mean', add_fixation=False),
    ]
    for cfg in configs:
        out = jax.block_until_ready(
            palimpsest_stimulus_combiner(sensory_response, weight, fixation_token, **cfg))
        ref = _reference(sensory_response, weight, fixation_token, **cfg)
        np.testing.assert_allclose(np.asarray(out), np.asarray(ref), rtol=1e-5, atol=1e-5)

    # Multi-tile grid path (B not a multiple of the batch tile -> padding + >=2 grid steps).
    B2 = 40
    sensory_response2 = jax.random.normal(k_x2, (B2, S, Din), dtype=jnp.float32)
    cfg = dict(combiner_type='a', agg_method='mean', add_fixation=True)
    out2 = jax.block_until_ready(
        palimpsest_stimulus_combiner(sensory_response2, weight, fixation_token,
                                     batch_tile=16, **cfg))
    ref2 = _reference(sensory_response2, weight, fixation_token, **cfg)
    np.testing.assert_allclose(np.asarray(out2), np.asarray(ref2), rtol=1e-5, atol=1e-5)

    # bf16 MXU-operand path (HBM-roofline option for v6e/v5e); looser tolerance by design.
    cfg = dict(combiner_type='b', agg_method='mean', add_fixation=True)
    out3 = jax.block_until_ready(
        palimpsest_stimulus_combiner(sensory_response, weight, fixation_token,
                                     input_dtype=jnp.bfloat16, **cfg))
    ref3 = _reference(sensory_response, weight, fixation_token, **cfg)
    np.testing.assert_allclose(np.asarray(out3), np.asarray(ref3), rtol=3e-2, atol=3e-2)

    # TODO(synk): the Poisson import in the original module is unused in forward; nothing to port.
    print("KERNEL_OK")
</pallas_src>

<mosaic_0001>
module attributes {stable_mosaic.version = 11 : i64} {
  func.func @_combiner_kernel(%arg0: i32, %arg1: i32, %arg2: memref<8x96xf32, #tpu.memory_space<vmem>>, %arg3: memref<32x128xf32, #tpu.memory_space<vmem>>, %arg4: memref<1x128xf32, #tpu.memory_space<vmem>>, %arg5: memref<8x128xf32, #tpu.memory_space<vmem>>) attributes {dimension_semantics = [#tpu.dimension_semantics<parallel>, #tpu.dimension_semantics<parallel>], iteration_bounds = array<i64: 1, 1>, scalar_prefetch = 0 : i64, scratch_operands = 0 : i64, tpu.core_type = #tpu.core_type<tc>, window_params = [{transform_indices = @transform_0, window_bounds = array<i64: 8, 96>}, {transform_indices = @transform_1, window_bounds = array<i64: 32, 128>}, {transform_indices = @transform_2, window_bounds = array<i64: 1, 128>}, {transform_indices = @transform_3, window_bounds = array<i64: 8, 128>}]} {
    %c0 = arith.constant 0 : index
    %c0_0 = arith.constant 0 : index
    %0 = vector.load %arg3[%c0, %c0_0] : memref<32x128xf32, #tpu.memory_space<vmem>>, vector<32x128xf32>
    %c0_1 = arith.constant 0 : index
    %c0_2 = arith.constant 0 : index
    %1 = vector.load %arg2[%c0_1, %c0_2] : memref<8x96xf32, #tpu.memory_space<vmem>>, vector<8x32xf32>
    %cst = arith.constant dense<0.000000e+00> : vector<8x128xf32>
    %2 = tpu.matmul %1, %0, %cst {dimension_numbers = #tpu.dot_dimension_numbers<[1], [0], [0], [1], [0, 0, 1, 1], [], []>} : vector<8x32xf32>, vector<32x128xf32>, vector<8x128xf32> -> vector<8x128xf32>
    %3 = math.tanh %2 : vector<8x128xf32>
    %c0_3 = arith.constant 0 : index
    %c32 = arith.constant 32 : index
    %4 = vector.load %arg2[%c0_3, %c32] : memref<8x96xf32, #tpu.memory_space<vmem>>, vector<8x32xf32>
    %cst_4 = arith.constant dense<0.000000e+00> : vector<8x128xf32>
    %5 = tpu.matmul %4, %0, %cst_4 {dimension_numbers = #tpu.dot_dimension_numbers<[1], [0], [0], [1], [0, 0, 1, 1], [], []>} : vector<8x32xf32>, vector<32x128xf32>, vector<8x128xf32> -> vector<8x128xf32>
    %6 = math.tanh %5 : vector<8x128xf32>
    %7 = arith.addf %3, %6 : vector<8x128xf32>
    %c0_5 = arith.constant 0 : index
    %c64 = arith.constant 64 : index
    %8 = vector.load %arg2[%c0_5, %c64] : memref<8x96xf32, #tpu.memory_space<vmem>>, vector<8x32xf32>
    %cst_6 = arith.constant dense<0.000000e+00> : vector<8x128xf32>
    %9 = tpu.matmul %8, %0, %cst_6 {dimension_numbers = #tpu.dot_dimension_numbers<[1], [0], [0], [1], [0, 0, 1, 1], [], []>} : vector<8x32xf32>, vector<32x128xf32>, vector<8x128xf32> -> vector<8x128xf32>
    %10 = math.tanh %9 : vector<8x128xf32>
    %11 = arith.addf %7, %10 : vector<8x128xf32>
    %cst_7 = arith.constant 0.333333343 : f32
    %12 = vector.broadcast %cst_7 : f32 to vector<8x128xf32>
    %13 = arith.mulf %11, %12 : vector<8x128xf32>
    %c0_8 = arith.constant 0 : index
    %c0_9 = arith.constant 0 : index
    %14 = vector.load %arg4[%c0_8, %c0_9] : memref<1x128xf32, #tpu.memory_space<vmem>>, vector<1x128xf32>
    %15 = vector.broadcast %14 : vector<1x128xf32> to vector<8x128xf32>
    %16 = arith.addf %13, %15 : vector<8x128xf32>
    %c0_10 = arith.constant 0 : index
    %c0_11 = arith.constant 0 : index
    %17 = vector.load %arg5[%c0_10, %c0_11] : memref<8x128xf32, #tpu.memory_space<vmem>>, vector<8x128xf32>
    tpu.vector_store %arg5[%c0_10, %c0_11], %16 {strides = array<i32>} : memref<8x128xf32, #tpu.memory_space<vmem>>, vector<8x128xf32>,
    return
  }
  func.func @transform_0(%arg0: i32, %arg1: i32) -> (i32, i32) {
    %c0_i32 = arith.constant 0 : i32
    %c0_i32_0 = arith.constant 0 : i32
    return %arg0, %c0_i32 : i32, i32
  }
  func.func @transform_1(%arg0: i32, %arg1: i32) -> (i32, i32) {
    %c0_i32 = arith.constant 0 : i32
    %c0_i32_0 = arith.constant 0 : i32
    return %c0_i32, %arg1 : i32, i32
  }
  func.func @transform_2(%arg0: i32, %arg1: i32) -> (i32, i32) {
    %c0_i32 = arith.constant 0 : i32
    %c0_i32_0 = arith.constant 0 : i32
    return %c0_i32, %arg1 : i32, i32
  }
  func.func @transform_3(%arg0: i32, %arg1: i32) -> (i32, i32) {
    %c0_i32 = arith.constant 0 : i32
    return %arg0, %arg1 : i32, i32
  }
}

</mosaic_0001>

<bundles_post_ra>
// kernel: tpu_custom_call.1
= control target key start
LH: loop header
LB: loop body
LE: loop exit
PB: predicated region body
PF: predicated region fallthrough
CT: control target
= control target key end

     0   :  { %8 = vsyncpa [#allocation3], 0  ;;  %s536_s0 = inlined_call_operand.hbm [shape: f32[8,96], index: 0, kind: input, shape index: {}]   ;;  %s537_s1 = inlined_call_operand.hbm [shape: f32[32,128], index: 1, kind: input, shape index: {}]   ;;  %s538_s2 = inlined_call_operand.vmem [shape: f32[1,128], index: 2, kind: input, shape index: {}]   ;;  %s539_s3 = inlined_call_operand.hbm [shape: f32[8,128], index: 3, kind: output, shape index: {}]  }
   0x1   :  { %9 = vsyncpa [#allocation6], 0 }
   0x2   :  { %10 = vsyncpa [#allocation4], 0  ;;  %s457_s12 = smov [#allocation2]   ;;  %s458_s14 = smov [#allocation5]  }
   0x3   :  { %s17_s13 = sshll.u32 %s457_s12, 4  ;;  %s26_s15 = sshll.u32 %s458_s14, 4  ;;  %s18_s13 = int_to_ptr.vmem [resolvable:$true] %s17_s13  ;;  %s487_s15 = int_to_ptr.vmem [resolvable:$true] %s26_s15 }
   0x4   :  { %s385_s18 = scalar_lea.hbm %s536_s0, 128 }
   0x5   :  { %p386_p0 = scmp.ne.s32.totalorder %s536_s0, %s385_s18  ;;  %p389_p1 = scmp.lt.u32.totalorder %s385_s18, %s536_s0 }
   0x7   :  { %p391_p2 = pnand %p389_p1, %p386_p0 }
   0x9   :  { %394 = shalt.err (!%p391_p2)
}
   0xa   :  { %s395_s23 = scalar_lea.vmem %s18_s13, 128  ;;  %p400_p4 = scmp.lt.s32.totalorder %s18_s13, %s18_s13 }
   0xb   :  { %p396_p3 = scmp.ne.s32.totalorder %s18_s13, %s395_s23  ;;  %p401_p5 = scmp.lt.s32.totalorder %s395_s23, %s395_s23 }
   0xd   :  { %p402_p6 = por %p401_p5, %p400_p4 }
   0xf   :  { %p403_p7 = pnand %p402_p6, %p396_p3 }
  0x11   :  { %406 = shalt.err (!%p403_p7)
}
  0x12   :  { %20 = dma.hbm_to_vmem [thread:$0]  %s536_s0, 128, %s18_s13, [#allocation3]  }
  0x13   :  { %s407_s28 = scalar_lea.hbm %s537_s1, 512 }
  0x14   :  { %p408_p8 = scmp.ne.s32.totalorder %s537_s1, %s407_s28  ;;  %p411_p9 = scmp.lt.u32.totalorder %s407_s28, %s537_s1 }
  0x16   :  { %p413_p10 = pnand %p411_p9, %p408_p8 }
  0x18   :  { %416 = shalt.err (!%p413_p10)
}
  0x19   :  { %s417_s6 = scalar_lea.vmem %s487_s15, 512  ;;  %p422_p12 = scmp.lt.s32.totalorder %s487_s15, %s487_s15 }
  0x1a   :  { %p418_p11 = scmp.ne.s32.totalorder %s487_s15, %s417_s6  ;;  %p423_p13 = scmp.lt.s32.totalorder %s417_s6, %s417_s6 }
  0x1c   :  { %p424_p0 = por %p423_p13, %p422_p12 }
  0x1e   :  { %p425_p1 = pnand %p424_p0, %p418_p11 }
  0x20   :  { %428 = shalt.err (!%p425_p1)
}
  0x21   :  { %s459_s0 = smov 128   ;;  %s460_s7 = smov 8  }
  0x22   :  { %32 = dma.hbm_to_vmem [thread:$0]  %s537_s1, 512, %s487_s15, [#allocation6], %s459_s0, %s459_s0, %s460_s7  }
  0x23   :  { %451 = dma.done.wait [#allocation3], 128  }
  0x24   :  { %452 = vsyncadd [#allocation3], 4294967168 }
  0x25   :  { %453 = dma.done.wait [#allocation6], 512  }
  0x26   :  { %454 = vsyncadd [#allocation6], 4294966784  ;;  %v461_v0 = vmov 0.0|0.0   ;;  %vm462_vm0 = vmmov 0   ;;  %v463_v1 = vmov 0.0   ;;  %v45_v2 = vld [vmem:[#allocation2] sm:$0xff] }
  0x27   :  { %351 = vmatprep.subr.bf16.mxu0 %v461_v0  ;;  %357 = vmatprep.subr.bf16.mxu1 %v461_v0  ;;  %v41_v3 = vld [vmem:[#allocation5] sm:$0xff]  ;;  %v42_v4 = vld [vmem:[#allocation5 + $0x8] sm:$0xff]  ;;  %s464_s10 = smov 96   ;;  %v43_v6 = vld [vmem:[#allocation5 + $0x10] sm:$0xff]  ;;  %s465_s1 = smov 64   ;;  %vm46_vm1 = vcmask 261120  }
  0x28   :  { %326 = vmatprep.mubr.msk.f32.mxu0 %vm462_vm0, %v463_v1  ;;  %337 = vmatprep.mubr.msk.f32.mxu1 %vm462_vm0, %v463_v1  ;;  %v352_v5 = vpack.c.bf16 %v42_v4, %v41_v3  ;;  %v44_v7 = vld [vmem:[#allocation5 + $0x18] sm:$0xff]  ;;  %s466_s13 = smov [#allocation7]  }
  0x29   :  { %121 = vrot.lane.b32.xlu0 %v45_v2, %s464_s10  ;;  %v355_v8 = vpack.c.bf16 %v44_v7, %v43_v6  ;;  %v302_v22 = vld [vmem:[%s538_s2] ss:$0 sm:$0xff]  ;;  %s289_s14 = sshll.u32 %s466_s13, 4  ;;  %s290_s14 = int_to_ptr.vmem [resolvable:$true] %s289_s14 }
  0x2a   :  { %353 = vmatpush3.bf16.msra.mxu0 %v352_v5  ;;  %359 = vmatpush3.bf16.msra.mxu1 %v352_v5  ;;  %s429_s15 = scalar_lea.vmem %s290_s14, 128  ;;  %p434_p3 = scmp.lt.s32.totalorder %s290_s14, %s290_s14 }
  0x2b   :  { %354 = vmatprep.subr.bf16.mxu0 %v461_v0  ;;  %360 = vmatprep.subr.bf16.mxu1 %v461_v0  ;;  %p430_p2 = scmp.ne.s32.totalorder %s290_s14, %s429_s15  ;;  %p435_p4 = scmp.lt.s32.totalorder %s429_s15, %s429_s15 }
  0x2d   :  { %197 = vrot.lane.b32.xlu0 %v45_v2, %s465_s1  ;;  %p436_p5 = por %p435_p4, %p434_p3 }
  0x2e   :  { %356 = vmatpush3.bf16.msra.mxu0 %v355_v8  ;;  %362 = vmatpush3.bf16.msra.mxu1 %v355_v8 }
  0x2f   :  { %363 = vmatprep.subr.bf16.mxu0 %v461_v0  ;;  %p437_p6 = pnand %p436_p5, %p430_p2 }
  0x31   :  { %327 = vmatmul.mubr.msk.f32.vlgmr.msra.gmra.mrb[0].mxu0 %vm46_vm1, %v45_v2 }
  0x32   :  { %365 = vmatpush3.bf16.msra.mxu0 %v352_v5  ;;  %348 = vmatprep.mubr.msk.f32.mxu0 %vm462_vm0, %v463_v1 }
  0x33   :  { %366 = vmatprep.subr.bf16.mxu0 %v461_v0 }
  0x36   :  { %368 = vmatpush3.bf16.msra.mxu0 %v355_v8 }
  0x9b   :  { %v122_v9 = vpop.permute.xlu0 %121 }
  0x9c   :  { %338 = vmatmul.mubr.msk.f32.vlgmr.msra.gmra.mrb[0].mxu1 %vm46_vm1, %v122_v9 }
  0x9f   :  { %v198_v10 = vpop.permute.xlu0 %197 }
  0xa0   :  { %349 = vmatmul.mubr.msk.f32.vlgmr.msra.gmra.mrb[2].mxu0 %vm46_vm1, %v198_v10 }
 0x104   :  { %v116_v11 = vpop.f32.mrb[0].mxu0 }
 0x105   :  { %v328_v12 = vpop.f32.mrb[1].mxu0  ;;  %379 = vtanh.f32 %v116_v11 }
 0x10f   :  { %v380_v17 = vpop.eup %379 }
 0x16f   :  { %v191_v13 = vpop.f32.mrb[0].mxu1 }
 0x170   :  { %381 = vtanh.f32 %v191_v13  ;;  %v339_v14 = vpop.f32.mrb[1].mxu1 }
 0x173   :  { %v267_v15 = vpop.f32.mrb[2].mxu0 }
 0x174   :  { %383 = vtanh.f32 %v267_v15  ;;  %v350_v16 = vpop.f32.mrb[3].mxu0 }
 0x17a   :  { %v382_v18 = vpop.eup %381 }
 0x17b   :  { %v196_v19 = vadd.f32 %v382_v18, %v380_v17 }
 0x17e   :  { %v384_v20 = vpop.eup %383 }
 0x17f   :  { %v272_v21 = vadd.f32 %v384_v20, %v196_v19 }
 0x181   :  { %v273_v23 = vmul.f32 0.33333334, %v272_v21 }
 0x183   :  { %v281_v24 = vadd.f32 %v302_v22, %v273_v23 }
 0x185   :  { %282 = vst [vmem:[#allocation7] sm:$0xff] %v281_v24 }
 0x186   :  { %440 = shalt.err (!%p437_p6)
}
 0x187   :  { %s441_s18 = scalar_lea.hbm %s539_s3, 128 }
 0x188   :  { %p442_p7 = scmp.ne.s32.totalorder %s539_s3, %s441_s18  ;;  %p445_p8 = scmp.lt.u32.totalorder %s441_s18, %s539_s3 }
 0x18a   :  { %p447_p9 = pnand %p445_p8, %p442_p7 }
 0x18c   :  { %450 = shalt.err (!%p447_p9)
}
 0x18d   :  { %292 = dma.vmem_to_hbm [thread:$0]  %s290_s14, 128, %s539_s3, [#allocation4]  }
 0x18e   :  { %455 = dma.done.wait [#allocation4], 128  }
 0x18f   :  { %456 = vsyncadd [#allocation4], 4294967168 }
 0x190   :  { %296 = vsyncpa [#allocation3], 1 }
 0x191   :  { %297 = vsyncpa [#allocation6], 1 }
 0x192   :  { %298 = vsyncpa [#allocation4], 1 }

</bundles_post_ra>
